<compile_context>
chip_gen: v7x
topology: tpu7x:2x2x1
jax: 0.10.0
libtpu: 0.0.40
codegen_flags: <defaults>
</compile_context>

<pallas_src>
import jax
import jax.numpy as jnp
from jax.experimental import pallas as pl
from jax.experimental.pallas import tpu as pltpu


def _round_up(v, m):
    return ((v + m - 1) // m) * m


def _rn_clf_kernel(x_ref, w_ref, b_ref, o_ref):
    # x_ref: (TN, C, HW)  native dtype (f32/bf16)
    # w_ref: (C, P)       pre-transposed, pre-scaled by 1/(H*W), VMEM-resident
    # b_ref: (1, P)       f32, VMEM-resident
    # o_ref: (TN, P)      lane-dense (P is a multiple of 128)
    pooled = jnp.sum(x_ref[...], axis=-1, dtype=jnp.float32)                # (TN, C)
    out = jnp.dot(pooled.astype(w_ref.dtype), w_ref[...],
                  preferred_element_type=jnp.float32)                       # (TN, P)
    o_ref[...] = (out + b_ref[...]).astype(o_ref.dtype)


def rn_clf_block(x, weight, bias, *, block_n=None):
    """AdaptiveAvgPool2d((1,1)) -> Flatten -> Linear.

    x: (N, C, H, W), weight: (n_otp, C), bias: (n_otp,) -> (N, n_otp)
    """
    N, C, H, W = x.shape
    HW = H * W
    n_otp = weight.shape[0]

    itemsize = jnp.dtype(x.dtype).itemsize
    # Sublane packing of the streaming/output dtype.
    subl = {4: 8, 2: 16, 1: 32}.get(itemsize, 8)

    # Weight dtype: f32 for f32 inputs, bf16 otherwise (halves resident VMEM).
    w_dtype = jnp.float32 if itemsize >= 4 else jnp.bfloat16
    w_itemsize = jnp.dtype(w_dtype).itemsize

    # ---- lane-dense output: pad class dim to a multiple of 128 ----
    p = max(_round_up(n_otp, 128), 128)

    # ---- chip-aware VMEM budget ----
    try:
        vmem_cap = int(pltpu.get_tpu_info().vmem_capacity_bytes)
    except Exception:
        vmem_cap = 64 << 20                     # conservative (v7x-sized) default
    # ~110 MiB on 128-MiB chips (v5e/v6e), ~54 MiB on v7x (64 MiB per TC).
    cap = int(min(0.85 * vmem_cap, vmem_cap - (8 << 20)))
    headroom = 8 << 20                          # Mosaic internal scratch etc.

    # ---- REAL (padded) VMEM footprints, not logical element counts ----
    hw_pad = _round_up(HW, 128)                 # lane padding of the x block
    c_pad_x = _round_up(C, subl)                # sublane padding of the x block
    per_row_x = c_pad_x * hw_pad * itemsize     # one batch row of x in VMEM
    per_row_o = p * itemsize                    # one output row in VMEM

    # Resident operands; counted with 2 buffers so the budget is safe even if
    # the Buffered(1) request below is not honoured by this jax version.
    w_bytes = _round_up(C, 8 if w_itemsize == 4 else 16) * p * w_itemsize
    b_bytes = 8 * p * 4
    resident = 2 * (w_bytes + b_bytes)

    # ---- batch tile: largest tn whose double-buffered x + out blocks fit ----
    if block_n is None:
        avail = max(cap - resident - headroom, 2 * subl * (per_row_x + per_row_o))
        tn = avail // (2 * (per_row_x + per_row_o))
    else:
        tn = int(block_n)
    tn = max(int(tn), 1)
    if tn >= N:
        tn = N                                  # single block: full-dim exception
    else:
        tn = max(subl, (tn // subl) * subl)     # sublane-aligned output tile

    # No jnp.pad of x: ragged last tile handled by Pallas (OOB output rows are
    # dropped; garbage rows are never used since we slice [:N, :n_otp] at the end).
    grid = (pl.cdiv(N, tn),)

    # ---- fold transpose + 1/(H*W) into the resident weight (once, wrapper) ----
    w_scaled = (weight.astype(jnp.float32).T) * (1.0 / float(HW))           # (C, n_otp)
    w_p = jnp.zeros((C, p), w_dtype).at[:, :n_otp].set(w_scaled.astype(w_dtype))
    b_p = jnp.zeros((1, p), jnp.float32).at[:, :n_otp].set(bias.astype(jnp.float32))

    # ---- declared VMEM limit from padded block shapes ----
    x_blk = tn * c_pad_x * hw_pad * itemsize
    o_blk = _round_up(tn, subl) * p * itemsize
    vmem_limit = int(min(max(2 * x_blk + 2 * o_blk + resident + headroom, 32 << 20),
                         cap))

    cost = pl.CostEstimate(
        flops=2 * N * C * (HW + p),
        transcendentals=0,
        bytes_accessed=(N * C * HW * itemsize          # dominant x stream (read once)
                        + C * p * w_itemsize + p * 4
                        + N * p * itemsize),
    )

    x_flat = x.reshape(N, C, HW)                # metadata-only reshape, no HBM pass

    def _call(resident_mode):
        extra = {} if resident_mode is None else {"pipeline_mode": resident_mode}
        return pl.pallas_call(
            _rn_clf_kernel,
            out_shape=jax.ShapeDtypeStruct((N, p), x.dtype),
            grid_spec=pltpu.PrefetchScalarGridSpec(
                num_scalar_prefetch=0,
                grid=grid,
                in_specs=[
                    pl.BlockSpec((tn, C, HW), lambda i: (i, 0, 0)),      # streamed x
                    pl.BlockSpec((C, p), lambda i: (0, 0), **extra),     # resident W
                    pl.BlockSpec((1, p), lambda i: (0, 0), **extra),     # resident b
                ],
                out_specs=pl.BlockSpec((tn, p), lambda i: (i, 0)),       # lane-dense
            ),
            compiler_params=pltpu.CompilerParams(
                dimension_semantics=("parallel",),   # shards batch over v7x's 2 TCs
                vmem_limit_bytes=vmem_limit,
            ),
            cost_estimate=cost,
        )(x_flat, w_p, b_p)

    try:
        # Constant-index resident operands -> request single buffering.
        out = _call(pl.Buffered(1))
    except Exception:
        # Fallback if this jax build rejects pipeline_mode / Buffered(1).
        out = _call(None)

    return out[:N, :n_otp]


if __name__ == "__main__":
    # Small shapes consistent with the module: N=2, n_inpch=4, H=W=16, n_otp=8
    N, C, H, W, n_otp = 2, 4, 16, 16, 8

    key = jax.random.PRNGKey(0)
    kx, kw, kb = jax.random.split(key, 3)

    x = jax.random.normal(kx, (N, C, H, W), dtype=jnp.float32)
    # Deterministic synthetic parameters (same shapes as nn.Linear(n_inpch, n_otp))
    bound = 1.0 / jnp.sqrt(jnp.float32(C))
    weight = jax.random.uniform(kw, (n_otp, C), jnp.float32, -bound, bound)
    bias = jax.random.uniform(kb, (n_otp,), jnp.float32, -bound, bound)

    out = rn_clf_block(x, weight, bias)
    out = jax.block_until_ready(out)

    # Sanity check against a pure-JAX reference of the same forward pass.
    ref = jnp.mean(x, axis=(2, 3)) @ weight.T + bias
    assert out.shape == (N, n_otp)
    assert jnp.allclose(out, ref, atol=1e-4, rtol=1e-4), "mismatch vs reference"

    print("KERNEL_OK")
</pallas_src>

<mosaic_0001>
module attributes {stable_mosaic.version = 11 : i64} {
  func.func @_rn_clf_kernel(%arg0: i32, %arg1: memref<2x4x256xf32, #tpu.memory_space<vmem>>, %arg2: memref<4x128xf32, #tpu.memory_space<vmem>>, %arg3: memref<1x128xf32, #tpu.memory_space<vmem>>, %arg4: memref<2x128xf32, #tpu.memory_space<vmem>>) attributes {dimension_semantics = [#tpu.dimension_semantics<parallel>], iteration_bounds = array<i64: 1>, scalar_prefetch = 0 : i64, scratch_operands = 0 : i64, tpu.core_type = #tpu.core_type<tc>, window_params = [{transform_indices = @transform_0, window_bounds = array<i64: 2, 4, 256>}, {pipeline_mode = #tpu.pipeline_mode<synchronous>, transform_indices = @transform_1, window_bounds = array<i64: 4, 128>}, {pipeline_mode = #tpu.pipeline_mode<synchronous>, transform_indices = @transform_2, window_bounds = array<i64: 1, 128>}, {transform_indices = @transform_3, window_bounds = array<i64: 2, 128>}]} {
    %c0 = arith.constant 0 : index
    %c0_0 = arith.constant 0 : index
    %c0_1 = arith.constant 0 : index
    %0 = vector.load %arg1[%c0, %c0_0, %c0_1] : memref<2x4x256xf32, #tpu.memory_space<vmem>>, vector<2x4x256xf32>
    %cst = arith.constant dense<0.000000e+00> : vector<2x4xf32>
    %1 = vector.multi_reduction <add>, %0, %cst [2] : vector<2x4x256xf32> to vector<2x4xf32>
    %c0_2 = arith.constant 0 : index
    %c0_3 = arith.constant 0 : index
    %2 = vector.load %arg2[%c0_2, %c0_3] : memref<4x128xf32, #tpu.memory_space<vmem>>, vector<4x128xf32>
    %cst_4 = arith.constant dense<0.000000e+00> : vector<2x128xf32>
    %3 = tpu.matmul %1, %2, %cst_4 {dimension_numbers = #tpu.dot_dimension_numbers<[1], [0], [0], [1], [0, 0, 1, 1], [], []>} : vector<2x4xf32>, vector<4x128xf32>, vector<2x128xf32> -> vector<2x128xf32>
    %c0_5 = arith.constant 0 : index
    %c0_6 = arith.constant 0 : index
    %4 = vector.load %arg3[%c0_5, %c0_6] : memref<1x128xf32, #tpu.memory_space<vmem>>, vector<1x128xf32>
    %5 = vector.broadcast %4 : vector<1x128xf32> to vector<2x128xf32>
    %6 = arith.addf %3, %5 : vector<2x128xf32>
    %c0_7 = arith.constant 0 : index
    %c0_8 = arith.constant 0 : index
    %7 = vector.load %arg4[%c0_7, %c0_8] : memref<2x128xf32, #tpu.memory_space<vmem>>, vector<2x128xf32>
    tpu.vector_store %arg4[%c0_7, %c0_8], %6 {strides = array<i32>} : memref<2x128xf32, #tpu.memory_space<vmem>>, vector<2x128xf32>,
    return
  }
  func.func @transform_0(%arg0: i32) -> (i32, i32, i32) {
    %c0_i32 = arith.constant 0 : i32
    %c0_i32_0 = arith.constant 0 : i32
    %c0_i32_1 = arith.constant 0 : i32
    return %arg0, %c0_i32, %c0_i32_0 : i32, i32, i32
  }
  func.func @transform_1(%arg0: i32) -> (i32, i32) {
    %c0_i32 = arith.constant 0 : i32
    %c0_i32_0 = arith.constant 0 : i32
    %c0_i32_1 = arith.constant 0 : i32
    return %c0_i32, %c0_i32_0 : i32, i32
  }
  func.func @transform_2(%arg0: i32) -> (i32, i32) {
    %c0_i32 = arith.constant 0 : i32
    %c0_i32_0 = arith.constant 0 : i32
    %c0_i32_1 = arith.constant 0 : i32
    return %c0_i32, %c0_i32_0 : i32, i32
  }
  func.func @transform_3(%arg0: i32) -> (i32, i32) {
    %c0_i32 = arith.constant 0 : i32
    %c0_i32_0 = arith.constant 0 : i32
    return %arg0, %c0_i32 : i32, i32
  }
}

module attributes {stable_mosaic.version = 11 : i64} {
  func.func @_rn_clf_kernel(%arg0: i32, %arg1: memref<2x4x256xf32, #tpu.memory_space<vmem>>, %arg2: memref<4x128xf32, #tpu.memory_space<vmem>>, %arg3: memref<1x128xf32, #tpu.memory_space<vmem>>, %arg4: memref<2x128xf32, #tpu.memory_space<vmem>>) attributes {dimension_semantics = [#tpu.dimension_semantics<parallel>], iteration_bounds = array<i64: 1>, scalar_prefetch = 0 : i64, scratch_operands = 0 : i64, tpu.core_type = #tpu.core_type<tc>, window_params = [{transform_indices = @transform_0, window_bounds = array<i64: 2, 4, 256>}, {pipeline_mode = #tpu.pipeline_mode<synchronous>, transform_indices = @transform_1, window_bounds = array<i64: 4, 128>}, {pipeline_mode = #tpu.pipeline_mode<synchronous>, transform_indices = @transform_2, window_bounds = array<i64: 1, 128>}, {transform_indices = @transform_3, window_bounds = array<i64: 2, 128>}]} {
    %c0 = arith.constant 0 : index
    %c0_0 = arith.constant 0 : index
    %c0_1 = arith.constant 0 : index
    %0 = vector.load %arg1[%c0, %c0_0, %c0_1] : memref<2x4x256xf32, #tpu.memory_space<vmem>>, vector<2x4x256xf32>
    %cst = arith.constant dense<0.000000e+00> : vector<2x4xf32>
    %1 = vector.multi_reduction <add>, %0, %cst [2] : vector<2x4x256xf32> to vector<2x4xf32>
    %c0_2 = arith.constant 0 : index
    %c0_3 = arith.constant 0 : index
    %2 = vector.load %arg2[%c0_2, %c0_3] : memref<4x128xf32, #tpu.memory_space<vmem>>, vector<4x128xf32>
    %cst_4 = arith.constant dense<0.000000e+00> : vector<2x128xf32>
    %3 = tpu.matmul %1, %2, %cst_4 {dimension_numbers = #tpu.dot_dimension_numbers<[1], [0], [0], [1], [0, 0, 1, 1], [], []>} : vector<2x4xf32>, vector<4x128xf32>, vector<2x128xf32> -> vector<2x128xf32>
    %c0_5 = arith.constant 0 : index
    %c0_6 = arith.constant 0 : index
    %4 = vector.load %arg3[%c0_5, %c0_6] : memref<1x128xf32, #tpu.memory_space<vmem>>, vector<1x128xf32>
    %5 = vector.broadcast %4 : vector<1x128xf32> to vector<2x128xf32>
    %6 = arith.addf %3, %5 : vector<2x128xf32>
    %c0_7 = arith.constant 0 : index
    %c0_8 = arith.constant 0 : index
    %7 = vector.load %arg4[%c0_7, %c0_8] : memref<2x128xf32, #tpu.memory_space<vmem>>, vector<2x128xf32>
    tpu.vector_store %arg4[%c0_7, %c0_8], %6 {strides = array<i32>} : memref<2x128xf32, #tpu.memory_space<vmem>>, vector<2x128xf32>,
    return
  }
  func.func @transform_0(%arg0: i32) -> (i32, i32, i32) {
    %c0_i32 = arith.constant 0 : i32
    %c0_i32_0 = arith.constant 0 : i32
    %c0_i32_1 = arith.constant 0 : i32
    return %arg0, %c0_i32, %c0_i32_0 : i32, i32, i32
  }
  func.func @transform_1(%arg0: i32) -> (i32, i32) {
    %c0_i32 = arith.constant 0 : i32
    %c0_i32_0 = arith.constant 0 : i32
    %c0_i32_1 = arith.constant 0 : i32
    return %c0_i32, %c0_i32_0 : i32, i32
  }
  func.func @transform_2(%arg0: i32) -> (i32, i32) {
    %c0_i32 = arith.constant 0 : i32
    %c0_i32_0 = arith.constant 0 : i32
    %c0_i32_1 = arith.constant 0 : i32
    return %c0_i32, %c0_i32_0 : i32, i32
  }
  func.func @transform_3(%arg0: i32) -> (i32, i32) {
    %c0_i32 = arith.constant 0 : i32
    %c0_i32_0 = arith.constant 0 : i32
    return %arg0, %c0_i32 : i32, i32
  }
}

</mosaic_0001>

<bundles_post_ra>
// kernel: tpu_custom_call.1
= control target key start
LH: loop header
LB: loop body
LE: loop exit
PB: predicated region body
PF: predicated region fallthrough
CT: control target
= control target key end

     0   :  { %8 = vsyncpa [#allocation3], 0  ;;  %s337_s0 = inlined_call_operand.hbm [shape: f32[2,4,256], index: 0, kind: input, shape index: {}]   ;;  %s338_s1 = inlined_call_operand.hbm [shape: f32[4,128], index: 1, kind: input, shape index: {}]   ;;  %s339_s2 = inlined_call_operand.vmem [shape: f32[1,128], index: 2, kind: input, shape index: {}]   ;;  %s340_s3 = inlined_call_operand.hbm [shape: f32[2,128], index: 3, kind: output, shape index: {}]  }
   0x1   :  { %9 = vsyncpa [#allocation6], 0 }
   0x2   :  { %10 = vsyncpa [#allocation4], 0  ;;  %s266_s12 = smov [#allocation2]   ;;  %s194_s16 = scalar_lea.hbm %s337_s0, 256 }
   0x3   :  { %s16_s13 = sshll.u32 %s266_s12, 4  ;;  %p195_p0 = scmp.ne.s32.totalorder %s337_s0, %s194_s16  ;;  %s17_s13 = int_to_ptr.vmem [resolvable:$true] %s16_s13 }
   0x4   :  { %p198_p1 = scmp.lt.u32.totalorder %s194_s16, %s337_s0 }
   0x6   :  { %p200_p2 = pnand %p198_p1, %p195_p0 }
   0x8   :  { %203 = shalt.err (!%p200_p2)
}
   0x9   :  { %s204_s21 = scalar_lea.vmem %s17_s13, 256  ;;  %p209_p4 = scmp.lt.s32.totalorder %s17_s13, %s17_s13 }
   0xa   :  { %p205_p3 = scmp.ne.s32.totalorder %s17_s13, %s204_s21  ;;  %p210_p5 = scmp.lt.s32.totalorder %s204_s21, %s204_s21 }
   0xc   :  { %p211_p6 = por %p210_p5, %p209_p4 }
   0xe   :  { %p212_p7 = pnand %p211_p6, %p205_p3 }
  0x10   :  { %215 = shalt.err (!%p212_p7)
}
  0x11   :  { %s267_s22 = smov 128   ;;  %s268_s23 = smov 8  }
  0x12   :  { %22 = dma.hbm_to_vmem [thread:$0]  %s337_s0, 256, %s17_s13, [#allocation3], %s267_s22, %s267_s22, %s268_s23  }
  0x13   :  { %s269_s26 = smov [#allocation5]   ;;  %s216_s30 = scalar_lea.hbm %s338_s1, 64 }
  0x14   :  { %s29_s27 = sshll.u32 %s269_s26, 4  ;;  %p217_p8 = scmp.ne.s32.totalorder %s338_s1, %s216_s30  ;;  %s30_s27 = int_to_ptr.vmem [resolvable:$true] %s29_s27 }
  0x15   :  { %p220_p9 = scmp.lt.u32.totalorder %s216_s30, %s338_s1 }
  0x17   :  { %p222_p10 = pnand %p220_p9, %p217_p8 }
  0x19   :  { %225 = shalt.err (!%p222_p10)
}
  0x1a   :  { %s226_s8 = scalar_lea.vmem %s30_s27, 64  ;;  %p231_p12 = scmp.lt.s32.totalorder %s30_s27, %s30_s27 }
  0x1b   :  { %p227_p11 = scmp.ne.s32.totalorder %s30_s27, %s226_s8  ;;  %p232_p13 = scmp.lt.s32.totalorder %s226_s8, %s226_s8 }
  0x1d   :  { %p233_p0 = por %p232_p13, %p231_p12 }
  0x1f   :  { %p234_p1 = pnand %p233_p0, %p227_p11 }
  0x21   :  { %237 = shalt.err (!%p234_p1)
}
  0x22   :  { %32 = dma.hbm_to_vmem [thread:$0]  %s338_s1, 64, %s30_s27, [#allocation6]  }
  0x23   :  { %260 = dma.done.wait [#allocation3], 256  }
  0x24   :  { %261 = vsyncadd [#allocation3], 4294967040 }
  0x25   :  { %262 = dma.done.wait [#allocation6], 64  }
  0x26   :  { %263 = vsyncadd [#allocation6], 4294967232  ;;  %vm49_vm0 = vcmask 1043456   ;;  %v41_v0 = vld [vmem:[#allocation2] sm:$0xff]  ;;  %v42_v1 = vld [vmem:[#allocation2 + $0x8] sm:$0xff]  ;;  %v270_v11 = vmov 0.0   ;;  %v70_v12 = vlaneseq }
  0x27   :  { %v45_v2 = vcombine.high %v41_v0, %v41_v0  ;;  %v50_v3 = vsel %vm49_vm0, %v41_v0, 0.0  ;;  %v46_v4 = vcombine.high %v42_v1, %v42_v1  ;;  %v55_v6 = vsel %vm49_vm0, %v42_v1, 0.0  ;;  %v60_v10 = vld [vmem:[#allocation5] sm:$0xf]  ;;  %180 = vmatprep.subr.mxu0 %v270_v11  ;;  %v175_v21 = vld [vmem:[%s339_s2] ss:$0 sm:$0xff] }
  0x28   :  { %vm271_vm1 = vmmov 0   ;;  %181 = vmatpush3.msk.msra.mxu0 %vm49_vm0, %v60_v10  ;;  %v71_v13 = vand.u32 127, %v70_v12  ;;  %v73_v14 = vshrl.u32 %v70_v12, 7  ;;  %vm80_vm2 = vcmask 1041409   ;;  %s272_s11 = smov [#allocation7]  }
  0x29   :  { %v51_v5 = vsel %vm49_vm0, %v45_v2, 0.0  ;;  %v56_v7 = vsel %vm49_vm0, %v46_v4, 0.0  ;;  %182 = vmatprep.mubr.msk.f32.mxu0 %vm271_vm1, %v270_v11  ;;  %vm82_vm3 = vcmask 31744   ;;  %s165_s12 = sshll.u32 %s272_s11, 4  ;;  %s166_s12 = int_to_ptr.vmem [resolvable:$true] %s165_s12 }
  0x2a   :  { %v52_v8 = vadd.f32 %v51_v5, %v50_v3  ;;  %v57_v9 = vadd.f32 %v56_v7, %v55_v6  ;;  %v74_v16 = vsub.s32 %v71_v13, %v73_v14  ;;  %s238_s13 = scalar_lea.vmem %s166_s12, 32  ;;  %p243_p3 = scmp.lt.s32.totalorder %s166_s12, %s166_s12 }
  0x2b   :  { %p239_p2 = scmp.ne.s32.totalorder %s166_s12, %s238_s13  ;;  %p244_p4 = scmp.lt.s32.totalorder %s238_s13, %s238_s13 }
  0x2c   :  { %53 = vadd.xlane.f32.xlu0 %v52_v8 }
  0x2d   :  { %p245_p5 = por %p244_p4, %p243_p3 }
  0x2f   :  { %p246_p6 = pnand %p245_p5, %p239_p2 }
  0x30   :  { %58 = vadd.xlane.f32.xlu0 %v57_v9 }
  0xb9   :  { %v54_v15 = vpop.xlane.xlu0 %53 }
  0xba   :  { %v75_v18 = vrot.slane %v54_v15, %v74_v16 }
  0xbd   :  { %v59_v17 = vpop.xlane.xlu0 %58 }
  0xbe   :  { %v79_v19 = vrot.slane %v59_v17, %v74_v16 }
  0xc0   :  { %v81_v20 = vsel %vm80_vm2, %v79_v19, %v75_v18 }
  0xc1   :  { %183 = vmatmul.mubr.msk.f32.vlgmr.msra.gmra.mrb[0].mxu0 %vm82_vm3, %v81_v20 }
 0x194   :  { %v154_v22 = vpop.f32.mrb[0].mxu0 }
 0x195   :  { %v155_v23 = vadd.f32 %v175_v21, %v154_v22  ;;  %v184_v24 = vpop.f32.mrb[1].mxu0 }
 0x197   :  { %158 = vst [vmem:[#allocation7] sm:$0x3] %v155_v23 }
 0x198   :  { %249 = shalt.err (!%p246_p6)
}
 0x199   :  { %s250_s16 = scalar_lea.hbm %s340_s3, 32 }
 0x19a   :  { %p251_p7 = scmp.ne.s32.totalorder %s340_s3, %s250_s16  ;;  %p254_p8 = scmp.lt.u32.totalorder %s250_s16, %s340_s3 }
 0x19c   :  { %p256_p9 = pnand %p254_p8, %p251_p7 }
 0x19e   :  { %259 = shalt.err (!%p256_p9)
}
 0x19f   :  { %168 = dma.vmem_to_hbm [thread:$0]  %s166_s12, 32, %s340_s3, [#allocation4]  }
 0x1a0   :  { %264 = dma.done.wait [#allocation4], 32  }
 0x1a1   :  { %265 = vsyncadd [#allocation4], 4294967264 }
 0x1a2   :  { %172 = vsyncpa [#allocation3], 1 }
 0x1a3   :  { %173 = vsyncpa [#allocation6], 1 }
 0x1a4   :  { %174 = vsyncpa [#allocation4], 1 }

// kernel: tpu_custom_call.1
= control target key start
LH: loop header
LB: loop body
LE: loop exit
PB: predicated region body
PF: predicated region fallthrough
CT: control target
= control target key end

     0   :  { %8 = vsyncpa [#allocation3], 0  ;;  %s337_s0 = inlined_call_operand.hbm [shape: f32[2,4,256], index: 0, kind: input, shape index: {}]   ;;  %s338_s1 = inlined_call_operand.hbm [shape: f32[4,128], index: 1, kind: input, shape index: {}]   ;;  %s339_s2 = inlined_call_operand.vmem [shape: f32[1,128], index: 2, kind: input, shape index: {}]   ;;  %s340_s3 = inlined_call_operand.hbm [shape: f32[2,128], index: 3, kind: output, shape index: {}]  }
   0x1   :  { %9 = vsyncpa [#allocation6], 0 }
   0x2   :  { %10 = vsyncpa [#allocation4], 0  ;;  %s266_s12 = smov [#allocation2]   ;;  %s194_s16 = scalar_lea.hbm %s337_s0, 256 }
   0x3   :  { %s16_s13 = sshll.u32 %s266_s12, 4  ;;  %p195_p0 = scmp.ne.s32.totalorder %s337_s0, %s194_s16  ;;  %s17_s13 = int_to_ptr.vmem [resolvable:$true] %s16_s13 }
   0x4   :  { %p198_p1 = scmp.lt.u32.totalorder %s194_s16, %s337_s0 }
   0x6   :  { %p200_p2 = pnand %p198_p1, %p195_p0 }
   0x8   :  { %203 = shalt.err (!%p200_p2)
}
   0x9   :  { %s204_s21 = scalar_lea.vmem %s17_s13, 256  ;;  %p209_p4 = scmp.lt.s32.totalorder %s17_s13, %s17_s13 }
   0xa   :  { %p205_p3 = scmp.ne.s32.totalorder %s17_s13, %s204_s21  ;;  %p210_p5 = scmp.lt.s32.totalorder %s204_s21, %s204_s21 }
   0xc   :  { %p211_p6 = por %p210_p5, %p209_p4 }
   0xe   :  { %p212_p7 = pnand %p211_p6, %p205_p3 }
  0x10   :  { %215 = shalt.err (!%p212_p7)
}
  0x11   :  { %s267_s22 = smov 128   ;;  %s268_s23 = smov 8  }
  0x12   :  { %22 = dma.hbm_to_vmem [thread:$0]  %s337_s0, 256, %s17_s13, [#allocation3], %s267_s22, %s267_s22, %s268_s23  }
  0x13   :  { %s269_s26 = smov [#allocation5]   ;;  %s216_s30 = scalar_lea.hbm %s338_s1, 64 }
  0x14   :  { %s29_s27 = sshll.u32 %s269_s26, 4  ;;  %p217_p8 = scmp.ne.s32.totalorder %s338_s1, %s216_s30  ;;  %s30_s27 = int_to_ptr.vmem [resolvable:$true] %s29_s27 }
  0x15   :  { %p220_p9 = scmp.lt.u32.totalorder %s216_s30, %s338_s1 }
  0x17   :  { %p222_p10 = pnand %p220_p9, %p217_p8 }
  0x19   :  { %225 = shalt.err (!%p222_p10)
}
  0x1a   :  { %s226_s8 = scalar_lea.vmem %s30_s27, 64  ;;  %p231_p12 = scmp.lt.s32.totalorder %s30_s27, %s30_s27 }
  0x1b   :  { %p227_p11 = scmp.ne.s32.totalorder %s30_s27, %s226_s8  ;;  %p232_p13 = scmp.lt.s32.totalorder %s226_s8, %s226_s8 }
  0x1d   :  { %p233_p0 = por %p232_p13, %p231_p12 }
  0x1f   :  { %p234_p1 = pnand %p233_p0, %p227_p11 }
  0x21   :  { %237 = shalt.err (!%p234_p1)
}
  0x22   :  { %32 = dma.hbm_to_vmem [thread:$0]  %s338_s1, 64, %s30_s27, [#allocation6]  }
  0x23   :  { %260 = dma.done.wait [#allocation3], 256  }
  0x24   :  { %261 = vsyncadd [#allocation3], 4294967040 }
  0x25   :  { %262 = dma.done.wait [#allocation6], 64  }
  0x26   :  { %263 = vsyncadd [#allocation6], 4294967232  ;;  %vm49_vm0 = vcmask 1043456   ;;  %v41_v0 = vld [vmem:[#allocation2] sm:$0xff]  ;;  %v42_v1 = vld [vmem:[#allocation2 + $0x8] sm:$0xff]  ;;  %v270_v11 = vmov 0.0   ;;  %v70_v12 = vlaneseq }
  0x27   :  { %v45_v2 = vcombine.high %v41_v0, %v41_v0  ;;  %v50_v3 = vsel %vm49_vm0, %v41_v0, 0.0  ;;  %v46_v4 = vcombine.high %v42_v1, %v42_v1  ;;  %v55_v6 = vsel %vm49_vm0, %v42_v1, 0.0  ;;  %v60_v10 = vld [vmem:[#allocation5] sm:$0xf]  ;;  %180 = vmatprep.subr.mxu0 %v270_v11  ;;  %v175_v21 = vld [vmem:[%s339_s2] ss:$0 sm:$0xff] }
  0x28   :  { %vm271_vm1 = vmmov 0   ;;  %181 = vmatpush3.msk.msra.mxu0 %vm49_vm0, %v60_v10  ;;  %v71_v13 = vand.u32 127, %v70_v12  ;;  %v73_v14 = vshrl.u32 %v70_v12, 7  ;;  %vm80_vm2 = vcmask 1041409   ;;  %s272_s11 = smov [#allocation7]  }
  0x29   :  { %v51_v5 = vsel %vm49_vm0, %v45_v2, 0.0  ;;  %v56_v7 = vsel %vm49_vm0, %v46_v4, 0.0  ;;  %182 = vmatprep.mubr.msk.f32.mxu0 %vm271_vm1, %v270_v11  ;;  %vm82_vm3 = vcmask 31744   ;;  %s165_s12 = sshll.u32 %s272_s11, 4  ;;  %s166_s12 = int_to_ptr.vmem [resolvable:$true] %s165_s12 }
  0x2a   :  { %v52_v8 = vadd.f32 %v51_v5, %v50_v3  ;;  %v57_v9 = vadd.f32 %v56_v7, %v55_v6  ;;  %v74_v16 = vsub.s32 %v71_v13, %v73_v14  ;;  %s238_s13 = scalar_lea.vmem %s166_s12, 32  ;;  %p243_p3 = scmp.lt.s32.totalorder %s166_s12, %s166_s12 }
  0x2b   :  { %p239_p2 = scmp.ne.s32.totalorder %s166_s12, %s238_s13  ;;  %p244_p4 = scmp.lt.s32.totalorder %s238_s13, %s238_s13 }
  0x2c   :  { %53 = vadd.xlane.f32.xlu0 %v52_v8 }
  0x2d   :  { %p245_p5 = por %p244_p4, %p243_p3 }
  0x2f   :  { %p246_p6 = pnand %p245_p5, %p239_p2 }
  0x30   :  { %58 = vadd.xlane.f32.xlu0 %v57_v9 }
  0xb9   :  { %v54_v15 = vpop.xlane.xlu0 %53 }
  0xba   :  { %v75_v18 = vrot.slane %v54_v15, %v74_v16 }
  0xbd   :  { %v59_v17 = vpop.xlane.xlu0 %58 }
  0xbe   :  { %v79_v19 = vrot.slane %v59_v17, %v74_v16 }
  0xc0   :  { %v81_v20 = vsel %vm80_vm2, %v79_v19, %v75_v18 }
  0xc1   :  { %183 = vmatmul.mubr.msk.f32.vlgmr.msra.gmra.mrb[0].mxu0 %vm82_vm3, %v81_v20 }
 0x194   :  { %v154_v22 = vpop.f32.mrb[0].mxu0 }
 0x195   :  { %v155_v23 = vadd.f32 %v175_v21, %v154_v22  ;;  %v184_v24 = vpop.f32.mrb[1].mxu0 }
 0x197   :  { %158 = vst [vmem:[#allocation7] sm:$0x3] %v155_v23 }
 0x198   :  { %249 = shalt.err (!%p246_p6)
}
 0x199   :  { %s250_s16 = scalar_lea.hbm %s340_s3, 32 }
 0x19a   :  { %p251_p7 = scmp.ne.s32.totalorder %s340_s3, %s250_s16  ;;  %p254_p8 = scmp.lt.u32.totalorder %s250_s16, %s340_s3 }
 0x19c   :  { %p256_p9 = pnand %p254_p8, %p251_p7 }
 0x19e   :  { %259 = shalt.err (!%p256_p9)
}
 0x19f   :  { %168 = dma.vmem_to_hbm [thread:$0]  %s166_s12, 32, %s340_s3, [#allocation4]  }
 0x1a0   :  { %264 = dma.done.wait [#allocation4], 32  }
 0x1a1   :  { %265 = vsyncadd [#allocation4], 4294967264 }
 0x1a2   :  { %172 = vsyncpa [#allocation3], 1 }
 0x1a3   :  { %173 = vsyncpa [#allocation6], 1 }
 0x1a4   :  { %174 = vsyncpa [#allocation4], 1 }

</bundles_post_ra>
